<compile_context>
chip_gen: v7x
topology: tpu7x:2x2x1
jax: 0.10.0
libtpu: 0.0.40
codegen_flags: <defaults>
</compile_context>

<pallas_src>
import jax
import jax.numpy as jnp
from jax.experimental import pallas as pl
from jax.experimental.pallas import tpu as pltpu


def eca_kernel(x_ref, len_ref, w_ref, o_ref):
    """One batch block: masked mean over T, k-tap channel conv, sigmoid, rescale."""
    x = x_ref[...]                                   # (Bblk, E, T), input dtype
    bblk, e, t = x.shape
    k = w_ref.shape[0]                               # conv taps (static), in SMEM
    pad = (k - 1) // 2

    xf = x.astype(jnp.float32)                       # f32 accumulation even for bf16 x
    lens = len_ref[...]                              # (Bblk, 1, 1) int32 valid lengths

    # --- masked mean over valid timesteps -----------------------------------
    t_idx = jax.lax.broadcasted_iota(jnp.int32, (bblk, 1, t), 2)
    mask = (t_idx < lens).astype(jnp.float32)        # (Bblk, 1, T)
    summed = jnp.sum(xf * mask, axis=2, keepdims=True)          # (Bblk, E, 1) f32
    len_f = jnp.maximum(lens, 1).astype(jnp.float32)            # guard length == 0
    avg = summed / len_f                                         # (Bblk, E, 1)

    # --- k-tap zero-padded conv across the channel (sublane) axis ------------
    # k shifted multiply-adds on the tiny (Bblk, E, 1) average: O(k*E) VPU work,
    # no (E, E) band buffer, no near-empty MXU matmul.
    if pad > 0:
        zpad = jnp.zeros((bblk, pad, 1), jnp.float32)
        avg_p = jnp.concatenate([zpad, avg, zpad], axis=1)       # (Bblk, E+2*pad, 1)
    else:
        avg_p = avg
    gate = w_ref[0] * avg_p[:, 0:e, :]
    for j in range(1, k):
        gate = gate + w_ref[j] * avg_p[:, j:j + e, :]
    gate = jax.nn.sigmoid(gate)                                  # (Bblk, E, 1)

    # --- channel-wise rescale (gate broadcasts over the T lanes) -------------
    # NaN/Inf in padded (t >= length) positions propagate exactly like the reference.
    o_ref[...] = (xf * gate).astype(o_ref.dtype)


def _vmem_budget():
    """Generation-aware scoped-VMEM limit and per-step slab cap (bytes)."""
    try:
        vmem_cap = int(pltpu.get_tpu_info().vmem_capacity_bytes)
    except Exception:
        vmem_cap = 64 << 20                          # assume smallest (v7x per-TC)
    vmem_limit = max(16 << 20, min(vmem_cap // 2, 64 << 20))   # 32 MiB v7x, 64 MiB v5e/v6e
    slab_cap = vmem_limit // 8                       # in(x2 buf) + out(x2 buf) + temps
    return slab_cap, vmem_limit


def eca_layer(x, length, conv_w, *, alias_input=False):
    """ECA forward.

    x:       (B, E, T) float32 / bfloat16
    length:  (B,) int          -- valid timesteps per sample
    conv_w:  (K,) float32      -- Conv1d(1, 1, K, padding=(K-1)//2, bias=False).weight[0, 0, :]
    alias_input: if True, the output aliases x's HBM buffer (use only when the
                 caller no longer needs x; donate x under jit for zero-copy).
    """
    b, e, t = x.shape
    k = conv_w.shape[0]

    lens3 = jnp.maximum(length.astype(jnp.int32), 0).reshape(b, 1, 1)
    w = conv_w.astype(jnp.float32).reshape(k)

    # ---- batch-block selection: biggest divisor of B whose slab fits the cap ----
    slab_cap, vmem_limit = _vmem_budget()
    per_sample = e * t * 4                           # f32 working bytes per sample
    bblk = 1
    for d in range(1, b + 1):
        if b % d == 0 and d * per_sample <= slab_cap:
            bblk = d
    # TODO(synk): if a single sample's (E, T) slab exceeds slab_cap (very large E*T),
    # switch to a two-pass path: (B, T-block) masked-sum reduction with a pl.when
    # finalize for the gate, then a lane-dense (B, T-block) scaling pass (also gives a
    # second "parallel" grid axis so both v7x TensorCores stay busy when B is small).

    grid = (b // bblk,)
    itemsize = x.dtype.itemsize
    cost = pl.CostEstimate(
        flops=3 * b * e * t + 2 * b * e * k,
        transcendentals=b * e,
        bytes_accessed=2 * b * e * t * itemsize + b * 4 + k * 4,
    )

    extra = {"input_output_aliases": {0: 0}} if alias_input else {}

    return pl.pallas_call(
        eca_kernel,
        out_shape=jax.ShapeDtypeStruct((b, e, t), x.dtype),
        grid=grid,
        in_specs=[
            pl.BlockSpec((bblk, e, t), lambda i: (i, 0, 0)),     # x batch block
            pl.BlockSpec((bblk, 1, 1), lambda i: (i, 0, 0)),     # per-sample lengths
            pl.BlockSpec(memory_space=pltpu.MemorySpace.SMEM),   # conv taps as scalars
        ],
        out_specs=pl.BlockSpec((bblk, e, t), lambda i: (i, 0, 0)),
        compiler_params=pltpu.CompilerParams(
            dimension_semantics=("parallel",),       # shard batch blocks across TCs
            vmem_limit_bytes=vmem_limit,
        ),
        cost_estimate=cost,
        **extra,
    )(x, lens3, w)


def reference(x, length, conv_w):
    """Pure-JAX reference mirroring the PyTorch ECALayer forward exactly."""
    b, e, t = x.shape
    k = conv_w.shape[0]
    pad = (k - 1) // 2
    t_idx = jnp.arange(t)[None, None, :]
    mask = (t_idx < length[:, None, None]).astype(x.dtype)
    avg = jnp.sum(x * mask, axis=-1) / length[:, None].astype(x.dtype)   # (B, E)
    avg_p = jnp.pad(avg, ((0, 0), (pad, pad)))                           # zero padding
    gate = jnp.zeros_like(avg)
    for j in range(k):
        gate = gate + conv_w[j] * avg_p[:, j:j + e]
    gate = jax.nn.sigmoid(gate)
    return x * gate[:, :, None]


if __name__ == "__main__":
    # Small shapes consistent with the module: x is (B, E, T), Conv1d kernel k_size=5.
    B, E, T, K = 2, 32, 16, 5

    key = jax.random.PRNGKey(0)
    kx, kw = jax.random.split(key, 2)

    x = jax.random.normal(kx, (B, E, T), dtype=jnp.float32)
    length = jnp.array([T, 9], dtype=jnp.int32)      # per-sample valid lengths
    conv_w = jax.random.normal(kw, (K,), dtype=jnp.float32) * 0.3

    ref = reference(x, length, conv_w)

    # Default (non-aliasing) path.
    out = jax.block_until_ready(eca_layer(x, length, conv_w))
    assert out.shape == (B, E, T)
    assert jnp.allclose(out, ref, atol=1e-5, rtol=1e-5), "mismatch vs reference"

    # Aliased-output path: caller no longer needs x -> donate it under jit.
    f_alias = jax.jit(lambda xx: eca_layer(xx, length, conv_w, alias_input=True),
                      donate_argnums=0)
    out2 = jax.block_until_ready(f_alias(x + 0.0))
    assert jnp.allclose(out2, ref, atol=1e-5, rtol=1e-5), "mismatch vs reference (aliased)"

    print("KERNEL_OK")
</pallas_src>

<mosaic_0001>
module attributes {stable_mosaic.version = 11 : i64} {
  func.func @eca_kernel(%arg0: i32, %arg1: memref<2x32x16xf32, #tpu.memory_space<vmem>>, %arg2: memref<2x1x1xi32, #tpu.memory_space<vmem>>, %arg3: memref<5xf32, #tpu.memory_space<smem>>, %arg4: memref<2x32x16xf32, #tpu.memory_space<vmem>>) attributes {dimension_semantics = [#tpu.dimension_semantics<parallel>], iteration_bounds = array<i64: 1>, scalar_prefetch = 0 : i64, scratch_operands = 0 : i64, tpu.core_type = #tpu.core_type<tc>, window_params = [{transform_indices = @transform_0, window_bounds = array<i64: 2, 32, 16>}, {transform_indices = @transform_1, window_bounds = array<i64: 2, 1, 1>}, {transform_indices = @transform_2, window_bounds = array<i64: 5>}, {transform_indices = @transform_3, window_bounds = array<i64: 2, 32, 16>}]} {
    %c0 = arith.constant 0 : index
    %c0_0 = arith.constant 0 : index
    %c0_1 = arith.constant 0 : index
    %0 = vector.load %arg1[%c0, %c0_0, %c0_1] : memref<2x32x16xf32, #tpu.memory_space<vmem>>, vector<2x32x16xf32>
    %c0_2 = arith.constant 0 : index
    %c0_3 = arith.constant 0 : index
    %c0_4 = arith.constant 0 : index
    %1 = vector.load %arg2[%c0_2, %c0_3, %c0_4] : memref<2x1x1xi32, #tpu.memory_space<vmem>>, vector<2x1x1xi32>
    %2 = tpu.iota {dimensions = array<i32: 2>} : vector<2x1x16xi32>
    %3 = vector.broadcast %1 : vector<2x1x1xi32> to vector<2x1x16xi32>
    %4 = arith.cmpi slt, %2, %3 : vector<2x1x16xi32>
    %5 = arith.extui %4 : vector<2x1x16xi1> to vector<2x1x16xi32>
    %6 = arith.sitofp %5 : vector<2x1x16xi32> to vector<2x1x16xf32>
    %7 = vector.broadcast %6 : vector<2x1x16xf32> to vector<2x32x16xf32>
    %8 = arith.mulf %0, %7 : vector<2x32x16xf32>
    %cst = arith.constant dense<0.000000e+00> : vector<2x32xf32>
    %9 = vector.multi_reduction <add>, %8, %cst [2] : vector<2x32x16xf32> to vector<2x32xf32>
    %10 = vector.shape_cast %9 : vector<2x32xf32> to vector<2x32x1xf32>
    %c1_i32 = arith.constant 1 : i32
    %11 = vector.broadcast %c1_i32 : i32 to vector<2x1x1xi32>
    %12 = arith.maxsi %1, %11 : vector<2x1x1xi32>
    %13 = arith.sitofp %12 : vector<2x1x1xi32> to vector<2x1x1xf32>
    %14 = vector.broadcast %13 : vector<2x1x1xf32> to vector<2x32x1xf32>
    %15 = arith.divf %10, %14 : vector<2x32x1xf32>
    %cst_5 = arith.constant 0.000000e+00 : f32
    %16 = vector.broadcast %cst_5 : f32 to vector<2x2x1xf32>
    %17 = tpu.concatenate %16, %15, %16 in 1 : vector<2x2x1xf32>, vector<2x32x1xf32>, vector<2x2x1xf32> -> vector<2x36x1xf32>
    %c0_6 = arith.constant 0 : index
    %18 = memref.load %arg3[%c0_6] : memref<5xf32, #tpu.memory_space<smem>>
    %19 = vector.extract_strided_slice %17 {offsets = [0, 0, 0], sizes = [2, 32, 1], strides = [1, 1, 1]} : vector<2x36x1xf32> to vector<2x32x1xf32>
    %20 = vector.broadcast %18 : f32 to vector<2x32x1xf32>
    %21 = arith.mulf %20, %19 : vector<2x32x1xf32>
    %c1 = arith.constant 1 : index
    %22 = memref.load %arg3[%c1] : memref<5xf32, #tpu.memory_space<smem>>
    %23 = vector.extract_strided_slice %17 {offsets = [0, 1, 0], sizes = [2, 32, 1], strides = [1, 1, 1]} : vector<2x36x1xf32> to vector<2x32x1xf32>
    %24 = vector.broadcast %22 : f32 to vector<2x32x1xf32>
    %25 = arith.mulf %24, %23 : vector<2x32x1xf32>
    %26 = arith.addf %21, %25 : vector<2x32x1xf32>
    %c2 = arith.constant 2 : index
    %27 = memref.load %arg3[%c2] : memref<5xf32, #tpu.memory_space<smem>>
    %28 = vector.extract_strided_slice %17 {offsets = [0, 2, 0], sizes = [2, 32, 1], strides = [1, 1, 1]} : vector<2x36x1xf32> to vector<2x32x1xf32>
    %29 = vector.broadcast %27 : f32 to vector<2x32x1xf32>
    %30 = arith.mulf %29, %28 : vector<2x32x1xf32>
    %31 = arith.addf %26, %30 : vector<2x32x1xf32>
    %c3 = arith.constant 3 : index
    %32 = memref.load %arg3[%c3] : memref<5xf32, #tpu.memory_space<smem>>
    %33 = vector.extract_strided_slice %17 {offsets = [0, 3, 0], sizes = [2, 32, 1], strides = [1, 1, 1]} : vector<2x36x1xf32> to vector<2x32x1xf32>
    %34 = vector.broadcast %32 : f32 to vector<2x32x1xf32>
    %35 = arith.mulf %34, %33 : vector<2x32x1xf32>
    %36 = arith.addf %31, %35 : vector<2x32x1xf32>
    %c4 = arith.constant 4 : index
    %37 = memref.load %arg3[%c4] : memref<5xf32, #tpu.memory_space<smem>>
    %38 = vector.extract_strided_slice %17 {offsets = [0, 4, 0], sizes = [2, 32, 1], strides = [1, 1, 1]} : vector<2x36x1xf32> to vector<2x32x1xf32>
    %39 = vector.broadcast %37 : f32 to vector<2x32x1xf32>
    %40 = arith.mulf %39, %38 : vector<2x32x1xf32>
    %41 = arith.addf %36, %40 : vector<2x32x1xf32>
    %42 = arith.negf %41 : vector<2x32x1xf32>
    %43 = math.exp %42 : vector<2x32x1xf32>
    %cst_7 = arith.constant 1.000000e+00 : f32
    %44 = vector.broadcast %cst_7 : f32 to vector<2x32x1xf32>
    %45 = arith.addf %44, %43 : vector<2x32x1xf32>
    %46 = arith.divf %44, %45 : vector<2x32x1xf32>
    %47 = vector.broadcast %46 : vector<2x32x1xf32> to vector<2x32x16xf32>
    %48 = arith.mulf %0, %47 : vector<2x32x16xf32>
    %c0_8 = arith.constant 0 : index
    %c0_9 = arith.constant 0 : index
    %c0_10 = arith.constant 0 : index
    %49 = vector.load %arg4[%c0_8, %c0_9, %c0_10] : memref<2x32x16xf32, #tpu.memory_space<vmem>>, vector<2x32x16xf32>
    tpu.vector_store %arg4[%c0_8, %c0_9, %c0_10], %48 {strides = array<i32>} : memref<2x32x16xf32, #tpu.memory_space<vmem>>, vector<2x32x16xf32>,
    return
  }
  func.func @transform_0(%arg0: i32) -> (i32, i32, i32) {
    %c0_i32 = arith.constant 0 : i32
    %c0_i32_0 = arith.constant 0 : i32
    %c0_i32_1 = arith.constant 0 : i32
    return %arg0, %c0_i32, %c0_i32_0 : i32, i32, i32
  }
  func.func @transform_1(%arg0: i32) -> (i32, i32, i32) {
    %c0_i32 = arith.constant 0 : i32
    %c0_i32_0 = arith.constant 0 : i32
    %c0_i32_1 = arith.constant 0 : i32
    return %arg0, %c0_i32, %c0_i32_0 : i32, i32, i32
  }
  func.func @transform_2(%arg0: i32) -> i32 {
    %c0_i32 = arith.constant 0 : i32
    %c0_i32_0 = arith.constant 0 : i32
    return %c0_i32 : i32
  }
  func.func @transform_3(%arg0: i32) -> (i32, i32, i32) {
    %c0_i32 = arith.constant 0 : i32
    %c0_i32_0 = arith.constant 0 : i32
    %c0_i32_1 = arith.constant 0 : i32
    return %arg0, %c0_i32, %c0_i32_0 : i32, i32, i32
  }
}

</mosaic_0001>

<bundles_post_ra>
// kernel: tpu_custom_call.1
= control target key start
LH: loop header
LB: loop body
LE: loop exit
PB: predicated region body
PF: predicated region fallthrough
CT: control target
= control target key end

     0   :  { %8 = vsyncpa [#allocation3], 0  ;;  %s826_s0 = inlined_call_operand.vmem [shape: f32[2,32,16], index: 0, kind: input, shape index: {}]   ;;  %s827_s1 = inlined_call_operand.vmem [shape: s32[2,1,1], index: 1, kind: input, shape index: {}]   ;;  %s828_s2 = inlined_call_operand.vmem [shape: f32[5], index: 2, kind: input, shape index: {}]   ;;  %s829_s3 = inlined_call_operand.vmem [shape: f32[2,32,16], index: 3, kind: output, shape index: {}]  }
   0x1   :  { %s19_s14 = sshll.u32 %s828_s2, 4  ;;  %s20_s14 = int_to_ptr.vmem [resolvable:$true] %s19_s14 }
   0x2   :  { %s559_s15 = scalar_lea.vmem %s20_s14, 16  ;;  %p564_p1 = scmp.lt.s32.totalorder %s20_s14, %s20_s14 }
   0x3   :  { %p560_p0 = scmp.ne.s32.totalorder %s20_s14, %s559_s15  ;;  %p565_p2 = scmp.lt.s32.totalorder %s559_s15, %s559_s15 }
   0x5   :  { %p566_p3 = por %p565_p2, %p564_p1 }
   0x7   :  { %p567_p4 = pnand %p566_p3, %p560_p0 }
   0x9   :  { %570 = shalt.err (!%p567_p4)
}
   0xa   :  { %s573_s16 = smov [#allocation2]  }
   0xb   :  { %22 = dma.vmem_to_smem %s20_s14, 16, %s573_s16, [#allocation3]  }
   0xc   :  { %571 = dma.done.wait [#allocation3], 16  }
   0xd   :  { %572 = vsyncadd [#allocation3], 4294967280 }
   0xe   :  { %26 = sfence }
   0xf   :  { %v35_v0 = vld [vmem:[%s827_s1] sm:$0x1]  ;;  %v574_v1 = vmov 0   ;;  %v36_v2 = vld [vmem:[%s827_s1 + $0x1] sm:$0x1]  ;;  %v37_v3 = vlaneseq  ;;  %v608_v9 = vld [vmem:[%s826_s0 + $0x10] sm:$0xff] }
  0x10   :  { %521 = vset.pattern.permute.xlu0 %v574_v1  ;;  %522 = vset.pattern.permute.xlu1 %v574_v1  ;;  %v613_v10 = vld [vmem:[%s826_s0] sm:$0xff]  ;;  %v575_v11 = vmov 0.0   ;;  %vm67_vm1 = vcmask 130048   ;;  %v618_v14 = vld [vmem:[%s826_s0 + $0x8] sm:$0xff]  ;;  %v628_v21 = vld [vmem:[%s826_s0 + $0x18] sm:$0xff]  ;;  %vm92_vm3 = vcmp.gt.s32.totalorder %v35_v0, 1 }
  0x11   :  { %40 = vperm.xlu0 %521, %v35_v0   ;;  %v43_v4 = vshrl.u32 %v37_v3, 7  ;;  %v38_v6 = vand.u32 127, %v37_v3  ;;  %v635_v25 = vld [vmem:[%s826_s0 + $0x20] sm:$0xff]  ;;  %v642_v28 = vld [vmem:[%s826_s0 + $0x28] sm:$0xff]  ;;  %v649_v31 = vld [vmem:[%s826_s0 + $0x30] sm:$0xff]  ;;  %v93_v38 = vsel %vm92_vm3, %v35_v0, 1 }
  0x12   :  { %v656_v34 = vld [vmem:[%s826_s0 + $0x38] sm:$0xff]  ;;  %v96_v39 = vcvt.s32.f32 %v93_v38  ;;  %vm94_vm4 = vcmp.gt.s32.totalorder %v36_v2, 1  ;;  %s506_s8 = sld [smem:[#allocation2 + $0x1]]  ;;  %s507_s9 = sld [smem:[#allocation2 + $0x2]]  ;;  %vm128_vm5 = vcmask 1041408   ;;  %vm189_vm6 = vcmask 1046528  }
  0x13   :  { %v44_v5 = vsub.s32 0, %v43_v4  ;;  %v95_v41 = vsel %vm94_vm4, %v36_v2, 1  ;;  %s157_s0 = sld [smem:[#allocation2]]  ;;  %s508_s10 = sld [smem:[#allocation2 + $0x3]]  ;;  %vm246_vm7 = vcmask 1045504   ;;  %vm303_vm8 = vcmask 1044480  }
  0x14   :  { %v97_v42 = vcvt.s32.f32 %v95_v41  ;;  %s509_s11 = sld [smem:[#allocation2 + $0x4]]  ;;  %vm360_vm9 = vcmask 1043456  }
  0x15   :  { %47 = vperm.xlu0 %521, %v36_v2   ;;  %v103_v40 = vrot.slane %v96_v39, %v44_v5 }
  0x16   :  { %v107_v44 = vrot.slane %v97_v42, %v44_v5 }
  0x17   :  { %523 = vrcp.f32 %v103_v40 }
  0x18   :  { %v663_v49 = vstv %s506_s8  ;;  %v665_v50 = vstv %s507_s9  ;;  %525 = vrcp.f32 %v107_v44 }
  0x19   :  { %v667_v52 = vstv %s157_s0  ;;  %v669_v54 = vstv %s508_s10 }
  0x1a   :  { %v671_v55 = vstv %s509_s11 }
  0x21   :  { %v524_v43 = vpop.eup %523 }
  0x90   :  { %v41_v7 = vpop.permute.xlu0 %40 }
  0x91   :  { %v45_v8 = vrot.slane %v41_v7, %v44_v5 }
  0x93   :  { %vm53_vm0 = vcmp.lt.s32.totalorder %v38_v6, %v45_v8 }
  0x94   :  { %v504_v12 = vsel %vm53_vm0, 1.0, %v575_v11  ;;  %v48_v13 = vpop.permute.xlu0 %47 }
  0x95   :  { %v52_v15 = vrot.slane %v48_v13, %v44_v5  ;;  %v61_v16 = vmul.f32 %v504_v12, %v608_v9  ;;  %v59_v17 = vmul.f32 %v504_v12, %v613_v10  ;;  %v60_v20 = vmul.f32 %v504_v12, %v618_v14 }
  0x96   :  { %v62_v23 = vmul.f32 %v504_v12, %v628_v21 }
  0x97   :  { %v74_v18 = vsel %vm67_vm1, %v61_v16, 0.0  ;;  %v68_v19 = vsel %vm67_vm1, %v59_v17, 0.0  ;;  %vm54_vm2 = vcmp.lt.s32.totalorder %v38_v6, %v52_v15  ;;  %v71_v22 = vsel %vm67_vm1, %v60_v20, 0.0 }
  0x98   :  { %75 = vadd.xlane.f32.xlu0 %v74_v18  ;;  %69 = vadd.xlane.f32.xlu1 %v68_v19  ;;  %v505_v24 = vsel %vm54_vm2, 1.0, %v575_v11  ;;  %v77_v26 = vsel %vm67_vm1, %v62_v23, 0.0 }
  0x99   :  { %v63_v27 = vmul.f32 %v505_v24, %v635_v25  ;;  %v64_v30 = vmul.f32 %v505_v24, %v642_v28  ;;  %v65_v33 = vmul.f32 %v505_v24, %v649_v31  ;;  %v66_v36 = vmul.f32 %v505_v24, %v656_v34 }
  0x9b   :  { %v80_v29 = vsel %vm67_vm1, %v63_v27, 0.0  ;;  %v83_v32 = vsel %vm67_vm1, %v64_v30, 0.0  ;;  %v86_v35 = vsel %vm67_vm1, %v65_v33, 0.0  ;;  %v89_v37 = vsel %vm67_vm1, %v66_v36, 0.0 }
  0x9c   :  { %72 = vadd.xlane.f32.xlu1 %v71_v22 }
  0xa0   :  { %78 = vadd.xlane.f32.xlu1 %v77_v26 }
  0xa4   :  { %81 = vadd.xlane.f32.xlu1 %v80_v29  ;;  %v699_v29 = vpop.eup %525 }
  0xa8   :  { %84 = vadd.xlane.f32.xlu1 %v83_v32 }
  0xac   :  { %87 = vadd.xlane.f32.xlu1 %v86_v35 }
  0xb0   :  { %90 = vadd.xlane.f32.xlu1 %v89_v37 }
 0x125   :  { %v76_v45 = vpop.xlane.xlu0 %75  ;;  %v70_v46 = vpop.xlane.xlu1 %69 }
 0x126   :  { %v111_v47 = vmul.f32 %v524_v43, %v70_v46  ;;  %v661_v48 = vmul.f32 %v524_v43, %v76_v45 }
 0x128   :  { %v129_v51 = vrot.slane %v111_v47, 6  ;;  %v132_v60 = vrot.slane %v661_v48, 6 }
 0x129   :  { %v73_v53 = vpop.xlane.xlu1 %72 }
 0x12a   :  { %v153_v56 = vsel %vm128_vm5, 0.0, %v129_v51  ;;  %v112_v57 = vmul.f32 %v524_v43, %v73_v53 }
 0x12b   :  { %v169_v58 = vmul.f32 %v663_v49, %v153_v56  ;;  %v226_v59 = vmul.f32 %v665_v50, %v153_v56  ;;  %v159_v62 = vmul.f32 %v667_v52, %v153_v56  ;;  %v283_v63 = vmul.f32 %v669_v54, %v153_v56 }
 0x12c   :  { %v130_v61 = vrot.slane %v112_v57, 6  ;;  %v340_v0 = vmul.f32 %v671_v55, %v153_v56 }
 0x12d   :  { %v79_v1 = vpop.xlane.xlu1 %78  ;;  %v190_v2 = vrot.slane %v169_v58, 1  ;;  %v247_v3 = vrot.slane %v226_v59, 2  ;;  %v304_v36 = vrot.slane %v283_v63, 3 }
 0x12e   :  { %v131_v4 = vsel %vm128_vm5, %v129_v51, %v130_v61  ;;  %v133_v5 = vsel %vm128_vm5, %v130_v61, %v132_v60  ;;  %v114_v11 = vmul.f32 %v524_v43, %v79_v1  ;;  %v361_v39 = vrot.slane %v340_v0, 4 }
 0x12f   :  { %v160_v6 = vmul.f32 %v667_v52, %v131_v4  ;;  %v170_v7 = vmul.f32 %v663_v49, %v131_v4  ;;  %v171_v8 = vmul.f32 %v663_v49, %v133_v5  ;;  %v227_v12 = vmul.f32 %v665_v50, %v131_v4 }
 0x130   :  { %v687_v13 = vmul.f32 %v665_v50, %v133_v5  ;;  %v284_v15 = vmul.f32 %v669_v54, %v131_v4  ;;  %v691_v16 = vmul.f32 %v669_v54, %v133_v5  ;;  %v341_v19 = vmul.f32 %v671_v55, %v131_v4 }
 0x131   :  { %v191_v17 = vrot.slane %v170_v7, 1  ;;  %v193_v18 = vrot.slane %v171_v8, 1  ;;  %v695_v20 = vmul.f32 %v671_v55, %v133_v5  ;;  %v82_v22 = vpop.xlane.xlu1 %81  ;;  %v248_v23 = vrot.slane %v227_v12, 2 }
 0x132   :  { %v250_v24 = vrot.slane %v687_v13, 2  ;;  %v305_v26 = vrot.slane %v284_v15, 3  ;;  %v307_v27 = vrot.slane %v691_v16, 3  ;;  %v362_v33 = vrot.slane %v341_v19, 4 }
 0x133   :  { %v192_v30 = vsel %vm189_vm6, %v190_v2, %v191_v17  ;;  %v194_v32 = vsel %vm189_vm6, %v191_v17, %v193_v18  ;;  %v364_v35 = vrot.slane %v695_v20, 4  ;;  %v161_v40 = vmul.f32 %v667_v52, %v133_v5 }
 0x134   :  { %v216_v37 = vadd.f32 %v192_v30, %v159_v62  ;;  %v217_v38 = vadd.f32 %v194_v32, %v160_v6  ;;  %v249_v41 = vsel %vm246_vm7, %v247_v3, %v248_v23  ;;  %v251_v42 = vsel %vm246_vm7, %v248_v23, %v250_v24 }
 0x135   :  { %v85_v43 = vpop.xlane.xlu1 %84  ;;  %v306_v46 = vsel %vm303_vm8, %v304_v36, %v305_v26  ;;  %v134_v47 = vrot.slane %v114_v11, 6  ;;  %v308_v48 = vsel %vm303_vm8, %v305_v26, %v307_v27  ;;  %v363_v51 = vsel %vm360_vm9, %v361_v39, %v362_v33 }
 0x136   :  { %v273_v44 = vadd.f32 %v249_v41, %v216_v37  ;;  %v274_v45 = vadd.f32 %v251_v42, %v217_v38  ;;  %v365_v53 = vsel %vm360_vm9, %v362_v33, %v364_v35  ;;  %v116_v56 = vmul.f32 %v699_v29, %v82_v22 }
 0x137   :  { %v135_v59 = vsel %vm128_vm5, %v132_v60, %v134_v47  ;;  %v155_v61 = vsel %vm128_vm5, %v134_v47, 0.0  ;;  %v117_v23 = vmul.f32 %v699_v29, %v85_v43 }
 0x138   :  { %v330_v57 = vadd.f32 %v306_v46, %v273_v44  ;;  %v331_v58 = vadd.f32 %v308_v48, %v274_v45  ;;  %v162_v62 = vmul.f32 %v667_v52, %v135_v59  ;;  %v172_v63 = vmul.f32 %v663_v49, %v135_v59 }
 0x139   :  { %v173_v0 = vmul.f32 %v663_v49, %v155_v61  ;;  %v229_v1 = vmul.f32 %v665_v50, %v135_v59  ;;  %v230_v4 = vmul.f32 %v665_v50, %v155_v61  ;;  %v286_v5 = vmul.f32 %v669_v54, %v135_v59  ;;  %v88_v6 = vpop.xlane.xlu1 %87 }
 0x13a   :  { %v387_v2 = vadd.f32 %v363_v51, %v330_v57  ;;  %v388_v3 = vadd.f32 %v365_v53, %v331_v58  ;;  %v195_v7 = vrot.slane %v172_v63, 1  ;;  %v287_v11 = vmul.f32 %v669_v54, %v155_v61 }
 0x13b   :  { %v197_v8 = vrot.slane %v173_v0, 1  ;;  %v252_v60 = vrot.slane %v229_v1, 2  ;;  %v254_v15 = vrot.slane %v230_v4, 2  ;;  %v309_v16 = vrot.slane %v286_v5, 3 }
 0x13c   :  { %v510_v12 = vmul.f32 -1.442695, %v387_v2  ;;  %v511_v13 = vmul.f32 -1.442695, %v388_v3  ;;  %v196_v17 = vsel %vm189_vm6, %v193_v18, %v195_v7  ;;  %v311_v22 = vrot.slane %v287_v11, 3 }
 0x13d   :  { %v198_v19 = vsel %vm189_vm6, %v195_v7, %v197_v8  ;;  %v218_v26 = vadd.f32 %v196_v17, %v161_v40  ;;  %v253_v32 = vsel %vm246_vm7, %v250_v24, %v252_v60  ;;  %v255_v33 = vsel %vm246_vm7, %v252_v60, %v254_v15  ;;  %v91_v42 = vpop.xlane.xlu1 %90 }
 0x13e   :  { %527 = vpow2.f32 %v510_v12  ;;  %v219_v30 = vadd.f32 %v198_v19, %v162_v62  ;;  %v310_v36 = vsel %vm303_vm8, %v307_v27, %v309_v16  ;;  %v343_v37 = vmul.f32 %v671_v55, %v135_v59 }
 0x13f   :  { %529 = vpow2.f32 %v511_v13  ;;  %v275_v38 = vadd.f32 %v253_v32, %v218_v26  ;;  %v344_v18 = vmul.f32 %v671_v55, %v155_v61  ;;  %v136_v41 = vrot.slane %v116_v56, 6 }
 0x140   :  { %v276_v39 = vadd.f32 %v255_v33, %v219_v30  ;;  %v312_v43 = vsel %vm303_vm8, %v309_v16, %v311_v22  ;;  %v366_v44 = vrot.slane %v343_v37, 4  ;;  %v137_v40 = vrot.slane %v117_v23, 6 }
 0x141   :  { %v118_v45 = vmul.f32 %v699_v29, %v88_v6  ;;  %v332_v24 = vadd.f32 %v310_v36, %v275_v38  ;;  %v368_v47 = vrot.slane %v344_v18, 4  ;;  %v154_v48 = vsel %vm128_vm5, 0.0, %v136_v41 }
 0x142   :  { %v333_v46 = vadd.f32 %v312_v43, %v276_v39  ;;  %v367_v27 = vsel %vm360_vm9, %v364_v35, %v366_v44  ;;  %v174_v51 = vmul.f32 %v663_v49, %v154_v48  ;;  %v231_v53 = vmul.f32 %v665_v50, %v154_v48 }
 0x143   :  { %v119_v56 = vmul.f32 %v699_v29, %v91_v42  ;;  %v369_v57 = vsel %vm360_vm9, %v366_v44, %v368_v47  ;;  %v389_v58 = vadd.f32 %v367_v27, %v332_v24  ;;  %v288_v59 = vmul.f32 %v669_v54, %v154_v48 }
 0x144   :  { %v345_v61 = vmul.f32 %v671_v55, %v154_v48  ;;  %v390_v62 = vadd.f32 %v369_v57, %v333_v46  ;;  %v163_v63 = vmul.f32 %v667_v52, %v154_v48  ;;  %v199_v0 = vrot.slane %v174_v51, 1 }
 0x145   :  { %v138_v20 = vsel %vm128_vm5, %v136_v41, %v137_v40  ;;  %v512_v35 = vmul.f32 -1.442695, %v389_v58  ;;  %v256_v1 = vrot.slane %v231_v53, 2  ;;  %v313_v2 = vrot.slane %v288_v59, 3 }
 0x146   :  { %v370_v3 = vrot.slane %v345_v61, 4  ;;  %v513_v4 = vmul.f32 -1.442695, %v390_v62  ;;  %v175_v29 = vmul.f32 %v663_v49, %v138_v20  ;;  %v232_v5 = vmul.f32 %v665_v50, %v138_v20 }
 0x147   :  { %v289_v6 = vmul.f32 %v669_v54, %v138_v20  ;;  %531 = vpow2.f32 %v512_v35  ;;  %v346_v8 = vmul.f32 %v671_v55, %v138_v20  ;;  %v139_v60 = vrot.slane %v118_v45, 6 }
 0x148   :  { %v528_v7 = vpop.eup %527  ;;  %v141_v11 = vrot.slane %v119_v56, 6  ;;  %533 = vpow2.f32 %v513_v4  ;;  %v200_v15 = vrot.slane %v175_v29, 1  ;;  %v257_v16 = vrot.slane %v232_v5, 2 }
 0x149   :  { %v530_v12 = vpop.eup %529  ;;  %v419_v13 = vadd.f32 1.0, %v528_v7  ;;  %v314_v19 = vrot.slane %v289_v6, 3  ;;  %v371_v22 = vrot.slane %v346_v8, 4  ;;  %v140_v23 = vsel %vm128_vm5, %v137_v40, %v139_v60 }
 0x14a   :  { %v420_v17 = vadd.f32 1.0, %v530_v12  ;;  %v164_v26 = vmul.f32 %v667_v52, %v138_v20  ;;  %v201_v30 = vsel %vm189_vm6, %v199_v0, %v200_v15  ;;  %v258_v32 = vsel %vm246_vm7, %v256_v1, %v257_v16 }
 0x14b   :  { %535 = vrcp.f32 %v419_v13  ;;  %v220_v33 = vadd.f32 %v201_v30, %v163_v63  ;;  %v315_v36 = vsel %vm303_vm8, %v313_v2, %v314_v19  ;;  %v165_v37 = vmul.f32 %v667_v52, %v140_v23 }
 0x14c   :  { %537 = vrcp.f32 %v420_v17  ;;  %v176_v38 = vmul.f32 %v663_v49, %v140_v23  ;;  %v233_v39 = vmul.f32 %v665_v50, %v140_v23  ;;  %v290_v18 = vmul.f32 %v669_v54, %v140_v23 }
 0x14d   :  { %v759_v41 = vmul.f32 %v671_v55, %v140_v23  ;;  %v277_v42 = vadd.f32 %v258_v32, %v220_v33  ;;  %v372_v43 = vsel %vm360_vm9, %v370_v3, %v371_v22  ;;  %v142_v44 = vsel %vm128_vm5, %v139_v60, %v141_v11 }
 0x14e   :  { %v156_v40 = vsel %vm128_vm5, %v141_v11, 0.0  ;;  %v202_v45 = vrot.slane %v176_v38, 1  ;;  %v259_v24 = vrot.slane %v233_v39, 2  ;;  %v316_v46 = vrot.slane %v290_v18, 3 }
 0x14f   :  { %v373_v47 = vrot.slane %v759_v41, 4  ;;  %v334_v48 = vadd.f32 %v315_v36, %v277_v42  ;;  %v166_v27 = vmul.f32 %v667_v52, %v142_v44  ;;  %v177_v51 = vmul.f32 %v663_v49, %v142_v44 }
 0x150   :  { %v178_v53 = vmul.f32 %v663_v49, %v156_v40  ;;  %v203_v56 = vsel %vm189_vm6, %v200_v15, %v202_v45  ;;  %v260_v57 = vsel %vm246_vm7, %v257_v16, %v259_v24  ;;  %v317_v58 = vsel %vm303_vm8, %v314_v19, %v316_v46 }
 0x151   :  { %v374_v59 = vsel %vm360_vm9, %v371_v22, %v373_v47  ;;  %v532_v61 = vpop.eup %531  ;;  %v391_v62 = vadd.f32 %v372_v43, %v334_v48  ;;  %v221_v63 = vadd.f32 %v203_v56, %v164_v26  ;;  %v204_v0 = vrot.slane %v177_v51, 1 }
 0x152   :  { %v206_v20 = vrot.slane %v178_v53, 1  ;;  %v534_v35 = vpop.eup %533  ;;  %v421_v1 = vadd.f32 1.0, %v532_v61  ;;  %v234_v52 = vmul.f32 %v665_v50, %v142_v44  ;;  %v235_v2 = vmul.f32 %v665_v50, %v156_v40 }
 0x153   :  { %v291_v49 = vmul.f32 %v669_v54, %v142_v44  ;;  %v422_v3 = vadd.f32 1.0, %v534_v35  ;;  %v514_v4 = vmul.f32 -1.442695, %v391_v62  ;;  %v278_v29 = vadd.f32 %v260_v57, %v221_v63 }
 0x154   :  { %v205_v5 = vsel %vm189_vm6, %v202_v45, %v204_v0  ;;  %539 = vrcp.f32 %v421_v1  ;;  %v207_v7 = vsel %vm189_vm6, %v204_v0, %v206_v20  ;;  %v261_v60 = vrot.slane %v234_v52, 2 }
 0x155   :  { %v536_v6 = vpop.eup %535  ;;  %v222_v8 = vadd.f32 %v205_v5, %v165_v37  ;;  %541 = vrcp.f32 %v422_v3  ;;  %v335_v12 = vadd.f32 %v317_v58, %v278_v29  ;;  %v223_v13 = vadd.f32 %v207_v7, %v166_v27 }
 0x156   :  { %v538_v11 = vpop.eup %537  ;;  %v263_v15 = vrot.slane %v235_v2, 2  ;;  %445 = vperm.xlu1 %522, %v536_v6   ;;  %543 = vpow2.f32 %v514_v4  ;;  %v262_v50 = vsel %vm246_vm7, %v259_v24, %v261_v60  ;;  %v292_v16 = vmul.f32 %v669_v54, %v156_v40 }
 0x157   :  { %v318_v17 = vrot.slane %v291_v49, 3  ;;  %450 = vperm.xlu0 %521, %v538_v11   ;;  %v392_v19 = vadd.f32 %v374_v59, %v335_v12  ;;  %v279_v23 = vadd.f32 %v262_v50, %v222_v8  ;;  %v348_v26 = vmul.f32 %v671_v55, %v142_v44 }
 0x158   :  { %v264_v22 = vsel %vm246_vm7, %v261_v60, %v263_v15  ;;  %v320_v33 = vrot.slane %v292_v16, 3  ;;  %v349_v36 = vmul.f32 %v671_v55, %v156_v40 }
 0x159   :  { %v280_v30 = vadd.f32 %v264_v22, %v223_v13  ;;  %v319_v32 = vsel %vm303_vm8, %v316_v46, %v318_v17  ;;  %v515_v37 = vmul.f32 -1.442695, %v392_v19  ;;  %v375_v39 = vrot.slane %v348_v26, 4 }
 0x15a   :  { %v336_v38 = vadd.f32 %v319_v32, %v279_v23  ;;  %v321_v18 = vsel %vm303_vm8, %v318_v17, %v320_v33  ;;  %v377_v54 = vrot.slane %v349_v36, 4 }
 0x15b   :  { %545 = vpow2.f32 %v515_v37  ;;  %v337_v41 = vadd.f32 %v321_v18, %v280_v30  ;;  %v376_v42 = vsel %vm360_vm9, %v373_v47, %v375_v39 }
 0x15c   :  { %v378_v43 = vsel %vm360_vm9, %v375_v39, %v377_v54  ;;  %v393_v45 = vadd.f32 %v376_v42, %v336_v38 }
 0x15d   :  { %v394_v44 = vadd.f32 %v378_v43, %v337_v41 }
 0x15e   :  { %v540_v24 = vpop.eup %539  ;;  %v516_v48 = vmul.f32 -1.442695, %v393_v45 }
 0x15f   :  { %v542_v46 = vpop.eup %541  ;;  %v517_v27 = vmul.f32 -1.442695, %v394_v44  ;;  %455 = vperm.xlu1 %522, %v540_v24  }
 0x160   :  { %v544_v55 = vpop.eup %543  ;;  %547 = vpow2.f32 %v516_v48 }
 0x161   :  { %v423_v40 = vadd.f32 1.0, %v544_v55  ;;  %549 = vpow2.f32 %v517_v27 }
 0x163   :  { %551 = vrcp.f32 %v423_v40  ;;  %460 = vperm.xlu1 %522, %v542_v46  }
 0x165   :  { %v546_v51 = vpop.eup %545 }
 0x166   :  { %v424_v53 = vadd.f32 1.0, %v546_v51 }
 0x168   :  { %553 = vrcp.f32 %v424_v53 }
 0x16a   :  { %v548_v56 = vpop.eup %547 }
 0x16b   :  { %v550_v47 = vpop.eup %549  ;;  %v425_v57 = vadd.f32 1.0, %v548_v56 }
 0x16c   :  { %v426_v58 = vadd.f32 1.0, %v550_v47 }
 0x16d   :  { %v552_v59 = vpop.eup %551  ;;  %555 = vrcp.f32 %v425_v57 }
 0x16e   :  { %557 = vrcp.f32 %v426_v58  ;;  %465 = vperm.xlu1 %522, %v552_v59  }
 0x172   :  { %v554_v61 = vpop.eup %553 }
 0x173   :  { %470 = vperm.xlu1 %522, %v554_v61  }
 0x177   :  { %v556_v62 = vpop.eup %555 }
 0x178   :  { %v558_v63 = vpop.eup %557  ;;  %475 = vperm.xlu0 %521, %v556_v62  }
 0x179   :  { %480 = vperm.xlu1 %522, %v558_v63  }
 0x1d5   :  { %v446_v0 = vpop.permute.xlu1 %445 }
 0x1d6   :  { %v451_v20 = vpop.permute.xlu0 %450  ;;  %v483_v35 = vmul.f32 %v446_v0, %v613_v10 }
 0x1d7   :  { %v484_v1 = vmul.f32 %v451_v20, %v618_v14 }
 0x1d8   :  { %491 = vst.msk [vmem:[%s829_s3] sm:$0xff] %vm67_vm1, %v483_v35 }
 0x1d9   :  { %492 = vst.msk [vmem:[%s829_s3 + $0x8] sm:$0xff] %vm67_vm1, %v484_v1 }
 0x1de   :  { %v456_v52 = vpop.permute.xlu1 %455 }
 0x1df   :  { %v485_v2 = vmul.f32 %v456_v52, %v608_v9 }
 0x1e1   :  { %493 = vst.msk [vmem:[%s829_s3 + $0x10] sm:$0xff] %vm67_vm1, %v485_v2 }
 0x1e2   :  { %v461_v10 = vpop.permute.xlu1 %460 }
 0x1e3   :  { %v486_v14 = vmul.f32 %v461_v10, %v628_v21 }
 0x1e5   :  { %494 = vst.msk [vmem:[%s829_s3 + $0x18] sm:$0xff] %vm67_vm1, %v486_v14 }
 0x1ed   :  { %v466_v49 = vpop.permute.xlu1 %465 }
 0x1ee   :  { %v487_v3 = vmul.f32 %v466_v49, %v635_v25 }
 0x1f0   :  { %495 = vst.msk [vmem:[%s829_s3 + $0x20] sm:$0xff] %vm67_vm1, %v487_v3 }
 0x1f2   :  { %v471_v9 = vpop.permute.xlu1 %470 }
 0x1f3   :  { %v488_v4 = vmul.f32 %v471_v9, %v642_v28 }
 0x1f5   :  { %496 = vst.msk [vmem:[%s829_s3 + $0x28] sm:$0xff] %vm67_vm1, %v488_v4 }
 0x1f7   :  { %v476_v21 = vpop.permute.xlu0 %475 }
 0x1f8   :  { %v489_v29 = vmul.f32 %v476_v21, %v649_v31  ;;  %v481_v5 = vpop.permute.xlu1 %480 }
 0x1f9   :  { %v490_v6 = vmul.f32 %v481_v5, %v656_v34 }
 0x1fa   :  { %497 = vst.msk [vmem:[%s829_s3 + $0x30] sm:$0xff] %vm67_vm1, %v489_v29 }
 0x1fb   :  { %498 = vst.msk [vmem:[%s829_s3 + $0x38] sm:$0xff] %vm67_vm1, %v490_v6 }
 0x1fc   :  { %503 = vsyncpa [#allocation3], 1 }

</bundles_post_ra>
